<compile_context>
chip_gen: v7x
topology: tpu7x:2x2x1
jax: 0.10.0
libtpu: 0.0.40
codegen_flags: <defaults>
</compile_context>

<pallas_src>
import jax
import jax.numpy as jnp
from jax import lax
from jax.experimental import pallas as pl
from jax.experimental.pallas import tpu as pltpu


def _autopad(k, p=None, d=1):
    """Same as ultralytics autopad (scalar k)."""
    if d > 1:
        k = d * (k - 1) + 1
    if p is None:
        p = k // 2
    return p


def _round_up(a, b):
    return ((a + b - 1) // b) * b


def _conv_bn_silu_kernel(w_ref, x_ref, s_ref, b_ref, o_ref, acc_ref):
    # w_ref: (Cs, tk)   conv weight K-tile (compute dtype)
    # x_ref: (tk, tp)   im2col activation tile (compute dtype)
    # s_ref: (Cs, 1)    BN scale (f32)         b_ref: (Cs, 1) BN bias (f32)
    # o_ref: (Cs, tp)   lane-dense output tile
    # acc_ref: (Cs, tp) f32 accumulator scratch (persists across the K grid axis)
    kk = pl.program_id(2)

    @pl.when(kk == 0)
    def _init():
        acc_ref[...] = jnp.zeros_like(acc_ref)

    acc_ref[...] += jnp.dot(w_ref[...], x_ref[...],
                            preferred_element_type=jnp.float32)

    @pl.when(kk == pl.num_programs(2) - 1)
    def _finalize():
        y = acc_ref[...] * s_ref[...] + b_ref[...]           # BN (eval), f32
        # SiLU = y*sigmoid(y) = 0.5*y*(1+tanh(y/2)): a single EUP op per element.
        o_ref[...] = (0.5 * y * (1.0 + jnp.tanh(0.5 * y))).astype(o_ref.dtype)


def _vmem_budget_bytes():
    cap = 64 * 1024 * 1024                    # conservative default (v7x per-TC VMEM)
    try:
        info = pltpu.get_tpu_info()
        cap = int(getattr(info, "vmem_capacity_bytes", cap)) or cap
    except Exception:
        pass
    return (cap * 7) // 8                     # leave headroom for compiler scratch


def _pick_tp(P, tp_cap):
    """Largest pixel tile (multiple of 128, <= tp_cap) dividing round_up(P, 128)."""
    Ppad = _round_up(P, 128)
    tp = 128
    t = 256
    while t <= min(tp_cap, Ppad):
        if Ppad % t == 0:
            tp = t
        t += 128
    return tp, Ppad


def _est_vmem(Cs, tk, tp, itemsize, w_bufs):
    return (w_bufs * Cs * tk * itemsize       # weight tile(s)
            + 2 * tk * tp * itemsize          # activation tile (double buffered)
            + 2 * Cs * tp * itemsize          # output tile (double buffered)
            + Cs * tp * 4                     # f32 accumulator scratch
            + 8 * Cs)                         # scale + bias columns (f32)


def conv_bn_silu(x, weight, gamma, beta, running_mean, running_var, *,
                 s=1, p=None, d=1, eps=1e-5,
                 compute_dtype=None, tp_max=None, tk=None):
    """Forward of ultralytics Conv (Conv2d bias=False -> BatchNorm2d(eval) -> SiLU).

    x:      (N, c1, H, W)   NCHW activation
    weight: (c2, c1, k, k)  Conv2d weight (OIHW), groups=1
    gamma/beta/running_mean/running_var: (c2,) BatchNorm2d params (eval semantics)
    returns (N, c2, Ho, Wo) in the compute dtype.
    """
    N, c1, H, W = x.shape
    c2, c1w, kh, kw = weight.shape
    assert c1w == c1 and kh == kw, "groups != 1 / non-square kernels not supported"
    k = kh
    p = _autopad(k, p, d)
    kd = d * (k - 1) + 1
    Ho = (H + 2 * p - kd) // s + 1
    Wo = (W + 2 * p - kd) // s + 1
    P = Ho * Wo
    Kdim = c1 * k * k

    if compute_dtype is None:
        compute_dtype = x.dtype               # never insert an implicit f32->bf16 cast pass
    compute_dtype = jnp.dtype(compute_dtype)
    itemsize = compute_dtype.itemsize

    # ---- BN (eval) as f32 per-channel scale/bias, applied in the epilogue --------
    scale = (gamma.astype(jnp.float32)
             / jnp.sqrt(running_var.astype(jnp.float32) + eps))          # (c2,)
    bias = beta.astype(jnp.float32) - running_mean.astype(jnp.float32) * scale

    # ---- channel padding: sublane granularity only (8 f32 / 16 bf16 / 32 int8) ---
    sub = max(8, 32 // itemsize)
    Cs = _round_up(c2, sub)

    # ---- tiling (generation aware) ------------------------------------------------
    budget = _vmem_budget_bytes()
    if tp_max is None:
        tp_max = 1024 if budget >= 96 * 1024 * 1024 else 512
    tp, Ppad = _pick_tp(P, tp_max)

    if tk is None:
        if _est_vmem(Cs, Kdim, tp, itemsize, 1) <= budget:
            tk_eff, Kpad = Kdim, Kdim                     # whole K resident
        else:
            tk_eff = 256 if Kdim > 256 else 128           # MXU-aligned K tile
            Kpad = _round_up(Kdim, tk_eff)
            while tp > 128 and _est_vmem(Cs, tk_eff, tp, itemsize, 2) > budget:
                tp, Ppad = _pick_tp(P, tp // 2)
    else:
        if tk >= Kdim:
            tk_eff, Kpad = Kdim, Kdim
        else:
            tk_eff = _round_up(tk, 128)
            Kpad = _round_up(Kdim, tk_eff)
    n_k = Kpad // tk_eff
    n_tiles = Ppad // tp
    w_bufs = 1 if n_k == 1 else 2
    est = _est_vmem(Cs, tk_eff, tp, itemsize, w_bufs)
    vmem_limit = int(min(budget, max(16 * 1024 * 1024, est + (8 << 20))))

    # ---- weight / BN tensors -------------------------------------------------------
    w_mat = weight.reshape(c2, Kdim)
    if w_mat.dtype != compute_dtype:
        w_mat = w_mat.astype(compute_dtype)
    if Cs != c2 or Kpad != Kdim:
        w_mat = jnp.pad(w_mat, ((0, Cs - c2), (0, Kpad - Kdim)))
    if Cs != c2:
        scale = jnp.pad(scale, (0, Cs - c2))              # padded channels: scale=bias=0
        bias = jnp.pad(bias, (0, Cs - c2))
    s_col = scale.reshape(Cs, 1)
    b_col = bias.reshape(Cs, 1)

    # ---- im2col (channel-major; k==1 is a pure reshape) ----------------------------
    # TODO(synk): for k>1 the k*k patch gather is still materialized in XLA; an
    # in-kernel DMA gather of padded-x row slabs (memory_space=pl.ANY + make_async_copy)
    # would cut input HBM traffic from ~k^2x to ~1x.
    if k == 1 and d == 1:
        x_p = x if p == 0 else jnp.pad(x, ((0, 0), (0, 0), (p, p), (p, p)))
        cols = x_p[:, :, ::s, ::s][:, :, :Ho, :Wo].reshape(N, Kdim, P)
    else:
        x_p = jnp.pad(x, ((0, 0), (0, 0), (p, p), (p, p)))
        patches = []
        for u in range(k):
            for v in range(k):
                patches.append(
                    x_p[:, :,
                        u * d: u * d + (Ho - 1) * s + 1: s,
                        v * d: v * d + (Wo - 1) * s + 1: s])
        cols = jnp.stack(patches, axis=2).reshape(N, Kdim, P)   # (c, u, v) K-order
    if cols.dtype != compute_dtype:
        cols = cols.astype(compute_dtype)
    if Kpad != Kdim or Ppad != P:
        cols = jnp.pad(cols, ((0, 0), (0, Kpad - Kdim), (0, Ppad - P)))

    # ---- pallas_call ----------------------------------------------------------------
    def _run(use_single_buffer):
        res = {"pipeline_mode": pl.Buffered(1)} if use_single_buffer else {}
        w_res = res if (use_single_buffer and n_k == 1) else {}
        grid_spec = pltpu.PrefetchScalarGridSpec(
            num_scalar_prefetch=0,
            grid=(N, n_tiles, n_k),
            in_specs=[
                pl.BlockSpec((Cs, tk_eff), lambda n, j, kk: (0, kk), **w_res),   # weight
                pl.BlockSpec((None, tk_eff, tp), lambda n, j, kk: (n, kk, j)),   # activation
                pl.BlockSpec((Cs, 1), lambda n, j, kk: (0, 0), **res),           # BN scale
                pl.BlockSpec((Cs, 1), lambda n, j, kk: (0, 0), **res),           # BN bias
            ],
            out_specs=pl.BlockSpec((None, Cs, tp), lambda n, j, kk: (n, 0, j)),
            scratch_shapes=[pltpu.VMEM((Cs, tp), jnp.float32)],
        )
        return pl.pallas_call(
            _conv_bn_silu_kernel,
            out_shape=jax.ShapeDtypeStruct((N, Cs, Ppad), compute_dtype),
            grid_spec=grid_spec,
            compiler_params=pltpu.CompilerParams(
                dimension_semantics=("parallel", "parallel", "arbitrary"),
                vmem_limit_bytes=vmem_limit),
        )(w_mat, cols, s_col, b_col)

    try:
        out = _run(True)
    except Exception:
        # pipeline_mode=pl.Buffered(1) not accepted by this jax build -> default buffering
        out = _run(False)

    # strip any channel / pixel padding (a no-op slice is skipped entirely); NCHW already.
    if Cs != c2 or Ppad != P:
        out = out[:, :c2, :P]
    return out.reshape(N, c2, Ho, Wo)


def _reference(x, weight, gamma, beta, running_mean, running_var, *,
               s=1, p=None, d=1, eps=1e-5):
    """Pure-JAX reference (independent of the Pallas path)."""
    k = weight.shape[2]
    p = _autopad(k, p, d)
    y = lax.conv_general_dilated(
        x.astype(jnp.float32), weight.astype(jnp.float32),
        window_strides=(s, s), padding=[(p, p), (p, p)],
        rhs_dilation=(d, d),
        dimension_numbers=("NCHW", "OIHW", "NCHW"),
        precision=lax.Precision.HIGHEST)
    scale = (gamma / jnp.sqrt(running_var + eps)).reshape(1, -1, 1, 1)
    bias = (beta - running_mean * gamma / jnp.sqrt(running_var + eps)).reshape(1, -1, 1, 1)
    y = y * scale + bias
    return y * jax.nn.sigmoid(y)


if __name__ == "__main__":
    key = jax.random.PRNGKey(0)
    k_x, k_w1, k_w3, k_xk, k_wk, k_g, k_b, k_m, k_v = jax.random.split(key, 9)

    N, c1, H, W = 2, 4, 16, 16
    c2 = 8

    x = jax.random.normal(k_x, (N, c1, H, W), dtype=jnp.float32)
    gamma = 1.0 + 0.1 * jax.random.normal(k_g, (c2,), dtype=jnp.float32)
    beta = 0.1 * jax.random.normal(k_b, (c2,), dtype=jnp.float32)
    rmean = 0.1 * jax.random.normal(k_m, (c2,), dtype=jnp.float32)
    rvar = jnp.abs(1.0 + 0.1 * jax.random.normal(k_v, (c2,), dtype=jnp.float32))

    # 1) module defaults k=1, s=1 (autopad -> 0): pure pointwise GEMM, no pad/slice at all
    w1 = 0.1 * jax.random.normal(k_w1, (c2, c1, 1, 1), dtype=jnp.float32)
    out1 = jax.block_until_ready(conv_bn_silu(x, w1, gamma, beta, rmean, rvar, s=1))
    ref1 = _reference(x, w1, gamma, beta, rmean, rvar, s=1)
    assert out1.shape == ref1.shape, (out1.shape, ref1.shape)
    assert jnp.allclose(out1, ref1, atol=2e-3, rtol=2e-3), \
        float(jnp.max(jnp.abs(out1 - ref1)))

    # 2) k=3, s=2 (autopad -> 1): im2col path, pixel-tile padding + output slice
    w3 = 0.1 * jax.random.normal(k_w3, (c2, c1, 3, 3), dtype=jnp.float32)
    out3 = jax.block_until_ready(conv_bn_silu(x, w3, gamma, beta, rmean, rvar, s=2))
    ref3 = _reference(x, w3, gamma, beta, rmean, rvar, s=2)
    assert out3.shape == ref3.shape, (out3.shape, ref3.shape)
    assert jnp.allclose(out3, ref3, atol=2e-3, rtol=2e-3), \
        float(jnp.max(jnp.abs(out3 - ref3)))

    # 3) bf16 activation/weight streams (f32 MXU accumulation + f32 BN/SiLU epilogue)
    outb = conv_bn_silu(x.astype(jnp.bfloat16), w3.astype(jnp.bfloat16),
                        gamma, beta, rmean, rvar, s=2)
    outb = jax.block_until_ready(outb).astype(jnp.float32)
    assert jnp.allclose(outb, ref3, atol=5e-2, rtol=5e-2), \
        float(jnp.max(jnp.abs(outb - ref3)))

    # 4) force the K-reduction grid path (Kdim = 16*3*3 = 144, tk=128 -> 2 K tiles)
    c1k = 16
    xk = jax.random.normal(k_xk, (N, c1k, H, W), dtype=jnp.float32)
    wk = 0.1 * jax.random.normal(k_wk, (c2, c1k, 3, 3), dtype=jnp.float32)
    outk = jax.block_until_ready(
        conv_bn_silu(xk, wk, gamma, beta, rmean, rvar, s=1, tk=128))
    refk = _reference(xk, wk, gamma, beta, rmean, rvar, s=1)
    assert outk.shape == refk.shape, (outk.shape, refk.shape)
    assert jnp.allclose(outk, refk, atol=2e-3, rtol=2e-3), \
        float(jnp.max(jnp.abs(outk - refk)))

    print("KERNEL_OK")
</pallas_src>

<mosaic_0001>
module attributes {stable_mosaic.version = 11 : i64} {
  func.func @_conv_bn_silu_kernel(%arg0: i32, %arg1: i32, %arg2: i32, %arg3: memref<8x4xf32, #tpu.memory_space<vmem>>, %arg4: memref<1x4x256xf32, #tpu.memory_space<vmem>>, %arg5: memref<8x1xf32, #tpu.memory_space<vmem>>, %arg6: memref<8x1xf32, #tpu.memory_space<vmem>>, %arg7: memref<1x8x256xf32, #tpu.memory_space<vmem>>, %arg8: memref<8x256xf32, #tpu.memory_space<vmem>>) attributes {dimension_semantics = [#tpu.dimension_semantics<parallel>, #tpu.dimension_semantics<parallel>, #tpu.dimension_semantics<arbitrary>], iteration_bounds = array<i64: 2, 1, 1>, scalar_prefetch = 0 : i64, scratch_operands = 1 : i64, tpu.core_type = #tpu.core_type<tc>, window_params = [{pipeline_mode = #tpu.pipeline_mode<synchronous>, transform_indices = @transform_0, window_bounds = array<i64: 8, 4>}, {transform_indices = @transform_1, window_bounds = array<i64: 1, 4, 256>}, {pipeline_mode = #tpu.pipeline_mode<synchronous>, transform_indices = @transform_2, window_bounds = array<i64: 8, 1>}, {pipeline_mode = #tpu.pipeline_mode<synchronous>, transform_indices = @transform_3, window_bounds = array<i64: 8, 1>}, {transform_indices = @transform_4, window_bounds = array<i64: 1, 8, 256>}]} {
    %c0_i32 = arith.constant 0 : i32
    %0 = arith.cmpi eq, %arg2, %c0_i32 : i32
    %1 = arith.extui %0 : i1 to i32
    %c0_i32_0 = arith.constant 0 : i32
    %2 = arith.cmpi ne, %1, %c0_i32_0 : i32
    scf.if %2 {
      %cst_11 = arith.constant 0.000000e+00 : f32
      %13 = vector.broadcast %cst_11 : f32 to vector<8x256xf32>
      %c0_12 = arith.constant 0 : index
      %c0_13 = arith.constant 0 : index
      %14 = vector.load %arg8[%c0_12, %c0_13] : memref<8x256xf32, #tpu.memory_space<vmem>>, vector<8x256xf32>
      tpu.vector_store %arg8[%c0_12, %c0_13], %13 {strides = array<i32>} : memref<8x256xf32, #tpu.memory_space<vmem>>, vector<8x256xf32>,
    } else {
    }
    %c0 = arith.constant 0 : index
    %c0_1 = arith.constant 0 : index
    %3 = vector.load %arg8[%c0, %c0_1] : memref<8x256xf32, #tpu.memory_space<vmem>>, vector<8x256xf32>
    %c0_2 = arith.constant 0 : index
    %c0_3 = arith.constant 0 : index
    %4 = vector.load %arg3[%c0_2, %c0_3] : memref<8x4xf32, #tpu.memory_space<vmem>>, vector<8x4xf32>
    %c0_4 = arith.constant 0 : index
    %c0_5 = arith.constant 0 : index
    %c0_6 = arith.constant 0 : index
    %5 = vector.load %arg4[%c0_4, %c0_5, %c0_6] : memref<1x4x256xf32, #tpu.memory_space<vmem>>, vector<1x4x256xf32>
    %6 = vector.shape_cast %5 : vector<1x4x256xf32> to vector<4x256xf32>
    %cst = arith.constant dense<0.000000e+00> : vector<8x256xf32>
    %7 = tpu.matmul %4, %6, %cst {dimension_numbers = #tpu.dot_dimension_numbers<[1], [0], [0], [1], [0, 0, 1, 1], [], []>} : vector<8x4xf32>, vector<4x256xf32>, vector<8x256xf32> -> vector<8x256xf32>
    %8 = arith.addf %3, %7 : vector<8x256xf32>
    %c0_7 = arith.constant 0 : index
    %c0_8 = arith.constant 0 : index
    %9 = vector.load %arg8[%c0_7, %c0_8] : memref<8x256xf32, #tpu.memory_space<vmem>>, vector<8x256xf32>
    tpu.vector_store %arg8[%c0_7, %c0_8], %8 {strides = array<i32>} : memref<8x256xf32, #tpu.memory_space<vmem>>, vector<8x256xf32>,
    %c0_i32_9 = arith.constant 0 : i32
    %10 = arith.cmpi eq, %arg2, %c0_i32_9 : i32
    %11 = arith.extui %10 : i1 to i32
    %c0_i32_10 = arith.constant 0 : i32
    %12 = arith.cmpi ne, %11, %c0_i32_10 : i32
    scf.if %12 {
      %c0_11 = arith.constant 0 : index
      %c0_12 = arith.constant 0 : index
      %13 = vector.load %arg8[%c0_11, %c0_12] : memref<8x256xf32, #tpu.memory_space<vmem>>, vector<8x256xf32>
      %c0_13 = arith.constant 0 : index
      %c0_14 = arith.constant 0 : index
      %14 = vector.load %arg5[%c0_13, %c0_14] : memref<8x1xf32, #tpu.memory_space<vmem>>, vector<8x1xf32>
      %15 = vector.broadcast %14 : vector<8x1xf32> to vector<8x256xf32>
      %16 = arith.mulf %13, %15 : vector<8x256xf32>
      %c0_15 = arith.constant 0 : index
      %c0_16 = arith.constant 0 : index
      %17 = vector.load %arg6[%c0_15, %c0_16] : memref<8x1xf32, #tpu.memory_space<vmem>>, vector<8x1xf32>
      %18 = vector.broadcast %17 : vector<8x1xf32> to vector<8x256xf32>
      %19 = arith.addf %16, %18 : vector<8x256xf32>
      %cst_17 = arith.constant 5.000000e-01 : f32
      %20 = vector.broadcast %cst_17 : f32 to vector<8x256xf32>
      %21 = arith.mulf %20, %19 : vector<8x256xf32>
      %cst_18 = arith.constant 5.000000e-01 : f32
      %22 = vector.broadcast %cst_18 : f32 to vector<8x256xf32>
      %23 = arith.mulf %22, %19 : vector<8x256xf32>
      %24 = math.tanh %23 : vector<8x256xf32>
      %cst_19 = arith.constant 1.000000e+00 : f32
      %25 = vector.broadcast %cst_19 : f32 to vector<8x256xf32>
      %26 = arith.addf %25, %24 : vector<8x256xf32>
      %27 = arith.mulf %21, %26 : vector<8x256xf32>
      %c0_20 = arith.constant 0 : index
      %c0_21 = arith.constant 0 : index
      %c0_22 = arith.constant 0 : index
      %28 = vector.load %arg7[%c0_20, %c0_21, %c0_22] : memref<1x8x256xf32, #tpu.memory_space<vmem>>, vector<1x8x256xf32>
      %29 = vector.shape_cast %28 : vector<1x8x256xf32> to vector<8x256xf32>
      %30 = vector.shape_cast %27 : vector<8x256xf32> to vector<1x8x256xf32>
      tpu.vector_store %arg7[%c0_20, %c0_21, %c0_22], %30 {strides = array<i32>} : memref<1x8x256xf32, #tpu.memory_space<vmem>>, vector<1x8x256xf32>,
    } else {
    }
    return
  }
  func.func @transform_0(%arg0: i32, %arg1: i32, %arg2: i32) -> (i32, i32) {
    %c0_i32 = arith.constant 0 : i32
    %c0_i32_0 = arith.constant 0 : i32
    return %c0_i32, %arg2 : i32, i32
  }
  func.func @transform_1(%arg0: i32, %arg1: i32, %arg2: i32) -> (i32, i32, i32) {
    %c0_i32 = arith.constant 0 : i32
    return %arg0, %arg2, %arg1 : i32, i32, i32
  }
  func.func @transform_2(%arg0: i32, %arg1: i32, %arg2: i32) -> (i32, i32) {
    %c0_i32 = arith.constant 0 : i32
    %c0_i32_0 = arith.constant 0 : i32
    %c0_i32_1 = arith.constant 0 : i32
    return %c0_i32, %c0_i32_0 : i32, i32
  }
  func.func @transform_3(%arg0: i32, %arg1: i32, %arg2: i32) -> (i32, i32) {
    %c0_i32 = arith.constant 0 : i32
    %c0_i32_0 = arith.constant 0 : i32
    %c0_i32_1 = arith.constant 0 : i32
    return %c0_i32, %c0_i32_0 : i32, i32
  }
  func.func @transform_4(%arg0: i32, %arg1: i32, %arg2: i32) -> (i32, i32, i32) {
    %c0_i32 = arith.constant 0 : i32
    %c0_i32_0 = arith.constant 0 : i32
    return %arg0, %c0_i32, %arg1 : i32, i32, i32
  }
}

module attributes {stable_mosaic.version = 11 : i64} {
  func.func @_conv_bn_silu_kernel(%arg0: i32, %arg1: i32, %arg2: i32, %arg3: memref<8x4xf32, #tpu.memory_space<vmem>>, %arg4: memref<1x4x256xf32, #tpu.memory_space<vmem>>, %arg5: memref<8x1xf32, #tpu.memory_space<vmem>>, %arg6: memref<8x1xf32, #tpu.memory_space<vmem>>, %arg7: memref<1x8x256xf32, #tpu.memory_space<vmem>>, %arg8: memref<8x256xf32, #tpu.memory_space<vmem>>) attributes {dimension_semantics = [#tpu.dimension_semantics<parallel>, #tpu.dimension_semantics<parallel>, #tpu.dimension_semantics<arbitrary>], iteration_bounds = array<i64: 2, 1, 1>, scalar_prefetch = 0 : i64, scratch_operands = 1 : i64, tpu.core_type = #tpu.core_type<tc>, window_params = [{transform_indices = @transform_0, window_bounds = array<i64: 8, 4>}, {transform_indices = @transform_1, window_bounds = array<i64: 1, 4, 256>}, {pipeline_mode = #tpu.pipeline_mode<synchronous>, transform_indices = @transform_2, window_bounds = array<i64: 8, 1>}, {pipeline_mode = #tpu.pipeline_mode<synchronous>, transform_indices = @transform_3, window_bounds = array<i64: 8, 1>}, {transform_indices = @transform_4, window_bounds = array<i64: 1, 8, 256>}]} {
    %c0_i32 = arith.constant 0 : i32
    %0 = arith.cmpi eq, %arg2, %c0_i32 : i32
    %1 = arith.extui %0 : i1 to i32
    %c0_i32_0 = arith.constant 0 : i32
    %2 = arith.cmpi ne, %1, %c0_i32_0 : i32
    scf.if %2 {
      %cst_11 = arith.constant 0.000000e+00 : f32
      %13 = vector.broadcast %cst_11 : f32 to vector<8x256xf32>
      %c0_12 = arith.constant 0 : index
      %c0_13 = arith.constant 0 : index
      %14 = vector.load %arg8[%c0_12, %c0_13] : memref<8x256xf32, #tpu.memory_space<vmem>>, vector<8x256xf32>
      tpu.vector_store %arg8[%c0_12, %c0_13], %13 {strides = array<i32>} : memref<8x256xf32, #tpu.memory_space<vmem>>, vector<8x256xf32>,
    } else {
    }
    %c0 = arith.constant 0 : index
    %c0_1 = arith.constant 0 : index
    %3 = vector.load %arg8[%c0, %c0_1] : memref<8x256xf32, #tpu.memory_space<vmem>>, vector<8x256xf32>
    %c0_2 = arith.constant 0 : index
    %c0_3 = arith.constant 0 : index
    %4 = vector.load %arg3[%c0_2, %c0_3] : memref<8x4xf32, #tpu.memory_space<vmem>>, vector<8x4xf32>
    %c0_4 = arith.constant 0 : index
    %c0_5 = arith.constant 0 : index
    %c0_6 = arith.constant 0 : index
    %5 = vector.load %arg4[%c0_4, %c0_5, %c0_6] : memref<1x4x256xf32, #tpu.memory_space<vmem>>, vector<1x4x256xf32>
    %6 = vector.shape_cast %5 : vector<1x4x256xf32> to vector<4x256xf32>
    %cst = arith.constant dense<0.000000e+00> : vector<8x256xf32>
    %7 = tpu.matmul %4, %6, %cst {dimension_numbers = #tpu.dot_dimension_numbers<[1], [0], [0], [1], [0, 0, 1, 1], [], []>} : vector<8x4xf32>, vector<4x256xf32>, vector<8x256xf32> -> vector<8x256xf32>
    %8 = arith.addf %3, %7 : vector<8x256xf32>
    %c0_7 = arith.constant 0 : index
    %c0_8 = arith.constant 0 : index
    %9 = vector.load %arg8[%c0_7, %c0_8] : memref<8x256xf32, #tpu.memory_space<vmem>>, vector<8x256xf32>
    tpu.vector_store %arg8[%c0_7, %c0_8], %8 {strides = array<i32>} : memref<8x256xf32, #tpu.memory_space<vmem>>, vector<8x256xf32>,
    %c0_i32_9 = arith.constant 0 : i32
    %10 = arith.cmpi eq, %arg2, %c0_i32_9 : i32
    %11 = arith.extui %10 : i1 to i32
    %c0_i32_10 = arith.constant 0 : i32
    %12 = arith.cmpi ne, %11, %c0_i32_10 : i32
    scf.if %12 {
      %c0_11 = arith.constant 0 : index
      %c0_12 = arith.constant 0 : index
      %13 = vector.load %arg8[%c0_11, %c0_12] : memref<8x256xf32, #tpu.memory_space<vmem>>, vector<8x256xf32>
      %c0_13 = arith.constant 0 : index
      %c0_14 = arith.constant 0 : index
      %14 = vector.load %arg5[%c0_13, %c0_14] : memref<8x1xf32, #tpu.memory_space<vmem>>, vector<8x1xf32>
      %15 = vector.broadcast %14 : vector<8x1xf32> to vector<8x256xf32>
      %16 = arith.mulf %13, %15 : vector<8x256xf32>
      %c0_15 = arith.constant 0 : index
      %c0_16 = arith.constant 0 : index
      %17 = vector.load %arg6[%c0_15, %c0_16] : memref<8x1xf32, #tpu.memory_space<vmem>>, vector<8x1xf32>
      %18 = vector.broadcast %17 : vector<8x1xf32> to vector<8x256xf32>
      %19 = arith.addf %16, %18 : vector<8x256xf32>
      %cst_17 = arith.constant 5.000000e-01 : f32
      %20 = vector.broadcast %cst_17 : f32 to vector<8x256xf32>
      %21 = arith.mulf %20, %19 : vector<8x256xf32>
      %cst_18 = arith.constant 5.000000e-01 : f32
      %22 = vector.broadcast %cst_18 : f32 to vector<8x256xf32>
      %23 = arith.mulf %22, %19 : vector<8x256xf32>
      %24 = math.tanh %23 : vector<8x256xf32>
      %cst_19 = arith.constant 1.000000e+00 : f32
      %25 = vector.broadcast %cst_19 : f32 to vector<8x256xf32>
      %26 = arith.addf %25, %24 : vector<8x256xf32>
      %27 = arith.mulf %21, %26 : vector<8x256xf32>
      %c0_20 = arith.constant 0 : index
      %c0_21 = arith.constant 0 : index
      %c0_22 = arith.constant 0 : index
      %28 = vector.load %arg7[%c0_20, %c0_21, %c0_22] : memref<1x8x256xf32, #tpu.memory_space<vmem>>, vector<1x8x256xf32>
      %29 = vector.shape_cast %28 : vector<1x8x256xf32> to vector<8x256xf32>
      %30 = vector.shape_cast %27 : vector<8x256xf32> to vector<1x8x256xf32>
      tpu.vector_store %arg7[%c0_20, %c0_21, %c0_22], %30 {strides = array<i32>} : memref<1x8x256xf32, #tpu.memory_space<vmem>>, vector<1x8x256xf32>,
    } else {
    }
    return
  }
  func.func @transform_0(%arg0: i32, %arg1: i32, %arg2: i32) -> (i32, i32) {
    %c0_i32 = arith.constant 0 : i32
    %c0_i32_0 = arith.constant 0 : i32
    return %c0_i32, %arg2 : i32, i32
  }
  func.func @transform_1(%arg0: i32, %arg1: i32, %arg2: i32) -> (i32, i32, i32) {
    %c0_i32 = arith.constant 0 : i32
    return %arg0, %arg2, %arg1 : i32, i32, i32
  }
  func.func @transform_2(%arg0: i32, %arg1: i32, %arg2: i32) -> (i32, i32) {
    %c0_i32 = arith.constant 0 : i32
    %c0_i32_0 = arith.constant 0 : i32
    %c0_i32_1 = arith.constant 0 : i32
    return %c0_i32, %c0_i32_0 : i32, i32
  }
  func.func @transform_3(%arg0: i32, %arg1: i32, %arg2: i32) -> (i32, i32) {
    %c0_i32 = arith.constant 0 : i32
    %c0_i32_0 = arith.constant 0 : i32
    %c0_i32_1 = arith.constant 0 : i32
    return %c0_i32, %c0_i32_0 : i32, i32
  }
  func.func @transform_4(%arg0: i32, %arg1: i32, %arg2: i32) -> (i32, i32, i32) {
    %c0_i32 = arith.constant 0 : i32
    %c0_i32_0 = arith.constant 0 : i32
    return %arg0, %c0_i32, %arg1 : i32, i32, i32
  }
}

</mosaic_0001>

<bundles_post_ra>
// kernel: tpu_custom_call.1
= control target key start
LH: loop header
LB: loop body
LE: loop exit
PB: predicated region body
PF: predicated region fallthrough
CT: control target
= control target key end

     0   :  { %9 = vsyncpa [#allocation4], 0  ;;  %s820_s0 = inlined_call_operand.vmem [shape: f32[8,4], index: 0, kind: input, shape index: {}]   ;;  %s821_s1 = inlined_call_operand.vmem [shape: f32[2,4,256], index: 1, kind: input, shape index: {}]   ;;  %s822_s2 = inlined_call_operand.vmem [shape: f32[8,1], index: 2, kind: input, shape index: {}]   ;;  %s823_s3 = inlined_call_operand.vmem [shape: f32[8,1], index: 3, kind: input, shape index: {}]   ;;  %s824_s4 = inlined_call_operand.hbm [shape: f32[2,8,256], index: 4, kind: output, shape index: {}]  }
   0x1   :  { %11 = vsyncpa [#allocation4 + $0x1], 0  ;;  %s699_s15 = smov 0   ;;  %s701_s16 = smov 0  }
   0x2   :  { %s703_s17 = smov 0   ;;  %s705_s18 = smov 0  }
   0x3   :  { %s707_s19 = smov 0   ;;  %s709_s20 = smov 0  }
   0x4 LB: > { %s509_s21 = sadd.s32 4294967295, %s669_s20   ;;  %s510_s22 = sadd.s32 4294967294, %s669_s20   ;;  %s669_s20 = sphi %s709_s20, %s17_s20   ;;  %s665_s19 = sphi %s707_s19, %s831_s19   ;;  %s661_s18 = sphi %s705_s18, %s830_s18   ;;  %s657_s17 = sphi %s703_s17, %s829_s17   ;;  %s653_s16 = sphi %s701_s16, %s828_s16   ;;  %s649_s15 = sphi %s699_s15, %s827_s15  }
   0x5   : > { %s36_s23 = sadd.s32 1, %s665_s19  ;;  %s143_s24 = sadd.s32 1, %s657_s17 }
   0x6   : > { %p38_p0 = scmp.ge.s32.totalorder %s36_s23, 2  ;;  %p153_p1 = scmp.ne.s32.totalorder %s657_s17, %s653_s16 }
   0x7   : > { %p154_p2 = scmp.eq.s32.totalorder %s509_s21, 1  ;;  %p159_p3 = scmp.ne.s32.totalorder %s653_s16, %s649_s15 }
   0x8   : > { %s833_s23 = smov (%p38_p0, %s36_s23), 0  ;;  %p160_p5 = scmp.eq.s32.totalorder %s510_s22, 1 }
   0x9   : > { %p739_p4 = por %p154_p2, %p153_p1  ;;  %s138_s26 = ssub.s32 %s665_s19, %s833_s23 }
   0xa   : > { %p514_p6 = scmp.ge.s32.totalorder %s669_s20, 1  ;;  %p141_p7 = scmp.eq.s32.totalorder %s138_s26, 0 }
   0xb   : > { %p746_p8 = por %p160_p5, %p159_p3  ;;  %p208_p9 = scmp.lt.s32.totalorder %s669_s20, 3 }
   0xc   : > { %s752_s28 = scalar_select %p141_p7, %s657_s17, %s143_s24  }
   0xd   : > { %p209_p10 = pnand %p514_p6, %p208_p9 }
   0xe   : > { %p251_p11 = scmp.lt.s32.totalorder (!%p209_p10), %s661_s18, 1  ;;  %v671_v0 = vmov (!%p209_p10), 0.0   ;;  %v672_v1 = vmov (!%p209_p10), 0   ;;  %v366_v2 = vld [vmem:[%s822_s2] sm:$0xff] (!%p209_p10)  ;;  %vm281_vm0 = vcmask (!%p209_p10), 1043456   ;;  %vm277_vm1 = vcmask (!%p209_p10), 31744  }
   0xf   : > { %212 = sbr.rel (%p209_p10) target bundleno = 279 (0x117), region = 36  ;;  %350 = vmatprep.mubr.f32.mxu0 (!%p209_p10), %v671_v0  ;;  %585 = vset.pattern.permute.xlu0 (!%p209_p10), %v672_v1  ;;  %v374_v3 = vld [vmem:[%s823_s3] sm:$0xff] (!%p209_p10)  ;;  %s243_s14 = sand.u32 (!%p209_p10), 1, %s653_s16  }
  0x10   : > { %369 = vperm.xlu0 (!%p209_p10), %585, %v366_v2   ;;  %v273_v6 = vld [vmem:[%s820_s0] sm:$0xff] (!%p209_p10)  ;;  %s515_s21 = sshll.u32 (!%p209_p10), %s243_s14, 4  ;;  %s527_s22 = sshll.u32 (!%p209_p10), %s661_s18, 8 }
  0x11   : > { %s245_s24 = scalar_lea.vmem (!%p209_p10), [#allocation3], %s515_s21  ;;  %s393_s6 = scalar_lea.sflag (!%p209_p10), [#allocation4], %s243_s14 }
  0x12   : > { %s409_s26 = sshll.u32 (!%p209_p10), %s245_s24, 4  ;;  %s775_s26 = int_to_ptr.vmem [resolvable:$true] %s409_s26 }
  0x13   : > { %s591_s7 = scalar_lea.vmem (!%p209_p10), %s775_s26, 256 }
  0x14   : > { %377 = vperm.xlu0 (!%p209_p10), %585, %v374_v3   ;;  %p592_p12 = scmp.ne.s32.totalorder (!%p209_p10), %s775_s26, %s591_s7 }
  0x16   : > { %s252_s5 = scalar_select %p251_p11, %s661_s18, 1 }
  0x17   : > { %p593_p13 = pnand %p592_p12, %p739_p4  ;;  %s673_s18 = smov [#allocation3]  }
  0x18   : > { %s526_s8 = sshll.u32 %s252_s5, 3  ;;  %s773_s5 = scalar_lea.hbm %s824_s4, %s527_s22 }
  0x19   : > { %s262_s11 = scalar_lea.vmem %s821_s1, %s526_s8  ;;  %p594_p0 = pneg %p593_p13 }
  0x1a   : > { %v274_v4 = vld [vmem:[%s262_s11] sm:$0xff]  ;;  %s595_s8 = sshll.u32 %s673_s18, 4  ;;  %s596_s8 = int_to_ptr.vmem [resolvable:$false] %s595_s8 }
  0x1b   : > { %v276_v5 = vcombine.high %v274_v4, %v274_v4  ;;  %s597_s9 = scalar_lea.vmem %s596_s8, 512  ;;  %p598_p1 = scmp.lt.s32.totalorder %s775_s26, %s596_s8 }
  0x1c   : > { %p599_p2 = scmp.lt.s32.totalorder %s597_s9, %s591_s7 }
  0x1d   : > { %518 = vmatprep.subr.msk.mxu0 %vm281_vm0, %v276_v5 }
  0x1e   : > { %519 = vmatpush1.msk.msra.mxu0 %vm281_vm0, %v274_v4  ;;  %p600_p3 = por %p599_p2, %p598_p1 }
  0x1f   : > { %520 = vmatmul.mubr.msk.f32.vlgmr.msra.gmra.mrb[0].mxu0 %vm277_vm1, %v273_v6 }
  0x20   : > { %p601_p5 = pnand %p600_p3, %p594_p0 }
  0x8f   : > { %v370_v7 = vpop.permute.xlu0 %369 }
  0x93   : > { %v378_v11 = vpop.permute.xlu0 %377 }
  0xf2   : > { %v352_v8 = vpop.f32.mrb[0].mxu0 }
  0xf3   : > { %v372_v9 = vmul.f32 %v370_v7, %v352_v8  ;;  %v354_v10 = vpop.f32.mrb[1].mxu0 }
  0xf4   : > { %v373_v12 = vmul.f32 %v370_v7, %v354_v10 }
  0xf5   : > { %v380_v13 = vadd.f32 %v378_v11, %v372_v9 }
  0xf6   : > { %v381_v14 = vadd.f32 %v378_v11, %v373_v12 }
  0xf7   : > { %v382_v15 = vmul.f32 0.5, %v380_v13 }
  0xf8   : > { %v383_v16 = vmul.f32 0.5, %v381_v14 }
  0xf9   : > { %587 = vtanh.f32 %v382_v15 }
  0xfa   : > { %589 = vtanh.f32 %v383_v16 }
 0x103   : > { %v588_v17 = vpop.eup %587 }
 0x104   : > { %v590_v18 = vpop.eup %589  ;;  %v386_v19 = vadd.f32 1.0, %v588_v17 }
 0x105   : > { %v387_v20 = vadd.f32 1.0, %v590_v18 }
 0x106   : > { %v388_v21 = vmul.f32 %v386_v19, %v382_v15 }
 0x107   : > { %v389_v22 = vmul.f32 %v387_v20, %v383_v16 }
 0x108   : > { %390 = vst [vmem:[%s245_s24] sm:$0xff] %v388_v21 }
 0x109   : > { %391 = vst [vmem:[%s245_s24 + $0x8] sm:$0xff] %v389_v22 }
 0x10a   : > { %604 = shalt.err (!%p601_p5)
}
 0x10b   : > { %s605_s10 = scalar_lea.hbm %s773_s5, 256  ;;  %s609_s13 = scalar_lea.hbm %s824_s4, 512 }
 0x10c   : > { %p606_p6 = scmp.ne.s32.totalorder %s773_s5, %s605_s10  ;;  %p610_p10 = scmp.lt.u32.totalorder %s773_s5, %s824_s4 }
 0x10d   : > { %p611_p11 = scmp.lt.u32.totalorder %s609_s13, %s605_s10  ;;  %p613_p13 = scmp.lt.u32.totalorder %s605_s10, %s773_s5 }
 0x10e   : > { %p607_p7 = pnand %p606_p6, %p739_p4 }
 0x10f   : > { %p612_p12 = por %p611_p11, %p610_p10 }
 0x110   : > { %p608_p9 = pneg %p607_p7 }
 0x111   : > { %p614_p0 = por %p613_p13, %p612_p12 }
 0x113   : > { %p615_p1 = pnand %p614_p0, %p608_p9 }
 0x115   : > { %618 = shalt.err (!%p615_p1)
}
 0x116   : > { %528 = dma.vmem_to_hbm [thread:$0]  (%p739_p4), %s775_s26, 256, %s773_s5, %s393_s6  }
 0x117 PF: > { %p534_p2 = scmp.ge.s32.totalorder %s669_s20, 2  ;;  %s421_s22 = sand.u32 1, %s649_s15  }
 0x118   : > { %s422_s24 = scalar_lea.sflag [#allocation4], %s421_s22 }
 0x119   : > { %p531_p3 = pnand %p534_p2, %p746_p8 }
 0x11b   : > { %644 = dma.done.wait (!%p531_p3), %s422_s24, 256  }
 0x11c   : > { %646 = vsyncadd (!%p531_p3), %s422_s24, 4294967040  ;;  %s17_s20 = sadd.s32 1, %s669_s20   ;;  %s827_s15 = smov %s653_s16 }
 0x11d   : > { %p14_p5 = scmp.ge.s32.totalorder %s17_s20, 4   ;;  %s828_s16 = smov %s657_s17 }
 0x11e   : > { %s829_s17 = smov %s752_s28  ;;  %s830_s18 = smov %s665_s19 }
 0x11f   : > { %s831_s19 = smov %s833_s23  ;;  %16 = sbr.rel (!%p14_p5) target bundleno = 4 (0x4), region = 82 }
 0x126   :  { %427 = vsyncpa [#allocation4], 1 }
 0x127   :  { %429 = vsyncpa [#allocation4 + $0x1], 1 }

// kernel: tpu_custom_call.1
= control target key start
LH: loop header
LB: loop body
LE: loop exit
PB: predicated region body
PF: predicated region fallthrough
CT: control target
= control target key end

     0   :  { %9 = vsyncpa [#allocation4], 0  ;;  %s820_s0 = inlined_call_operand.vmem [shape: f32[8,4], index: 0, kind: input, shape index: {}]   ;;  %s821_s1 = inlined_call_operand.vmem [shape: f32[2,4,256], index: 1, kind: input, shape index: {}]   ;;  %s822_s2 = inlined_call_operand.vmem [shape: f32[8,1], index: 2, kind: input, shape index: {}]   ;;  %s823_s3 = inlined_call_operand.vmem [shape: f32[8,1], index: 3, kind: input, shape index: {}]   ;;  %s824_s4 = inlined_call_operand.hbm [shape: f32[2,8,256], index: 4, kind: output, shape index: {}]  }
   0x1   :  { %11 = vsyncpa [#allocation4 + $0x1], 0  ;;  %s699_s15 = smov 0   ;;  %s701_s16 = smov 0  }
   0x2   :  { %s703_s17 = smov 0   ;;  %s705_s18 = smov 0  }
   0x3   :  { %s707_s19 = smov 0   ;;  %s709_s20 = smov 0  }
   0x4 LB: > { %s509_s21 = sadd.s32 4294967295, %s669_s20   ;;  %s510_s22 = sadd.s32 4294967294, %s669_s20   ;;  %s669_s20 = sphi %s709_s20, %s17_s20   ;;  %s665_s19 = sphi %s707_s19, %s831_s19   ;;  %s661_s18 = sphi %s705_s18, %s830_s18   ;;  %s657_s17 = sphi %s703_s17, %s829_s17   ;;  %s653_s16 = sphi %s701_s16, %s828_s16   ;;  %s649_s15 = sphi %s699_s15, %s827_s15  }
   0x5   : > { %s36_s23 = sadd.s32 1, %s665_s19  ;;  %s143_s24 = sadd.s32 1, %s657_s17 }
   0x6   : > { %p38_p0 = scmp.ge.s32.totalorder %s36_s23, 2  ;;  %p153_p1 = scmp.ne.s32.totalorder %s657_s17, %s653_s16 }
   0x7   : > { %p154_p2 = scmp.eq.s32.totalorder %s509_s21, 1  ;;  %p159_p3 = scmp.ne.s32.totalorder %s653_s16, %s649_s15 }
   0x8   : > { %s833_s23 = smov (%p38_p0, %s36_s23), 0  ;;  %p160_p5 = scmp.eq.s32.totalorder %s510_s22, 1 }
   0x9   : > { %p739_p4 = por %p154_p2, %p153_p1  ;;  %s138_s26 = ssub.s32 %s665_s19, %s833_s23 }
   0xa   : > { %p514_p6 = scmp.ge.s32.totalorder %s669_s20, 1  ;;  %p141_p7 = scmp.eq.s32.totalorder %s138_s26, 0 }
   0xb   : > { %p746_p8 = por %p160_p5, %p159_p3  ;;  %p208_p9 = scmp.lt.s32.totalorder %s669_s20, 3 }
   0xc   : > { %s752_s28 = scalar_select %p141_p7, %s657_s17, %s143_s24  }
   0xd   : > { %p209_p10 = pnand %p514_p6, %p208_p9 }
   0xe   : > { %p251_p11 = scmp.lt.s32.totalorder (!%p209_p10), %s661_s18, 1  ;;  %v671_v0 = vmov (!%p209_p10), 0.0   ;;  %v672_v1 = vmov (!%p209_p10), 0   ;;  %v366_v2 = vld [vmem:[%s822_s2] sm:$0xff] (!%p209_p10)  ;;  %vm281_vm0 = vcmask (!%p209_p10), 1043456   ;;  %vm277_vm1 = vcmask (!%p209_p10), 31744  }
   0xf   : > { %212 = sbr.rel (%p209_p10) target bundleno = 279 (0x117), region = 36  ;;  %350 = vmatprep.mubr.f32.mxu0 (!%p209_p10), %v671_v0  ;;  %585 = vset.pattern.permute.xlu0 (!%p209_p10), %v672_v1  ;;  %v374_v3 = vld [vmem:[%s823_s3] sm:$0xff] (!%p209_p10)  ;;  %s243_s14 = sand.u32 (!%p209_p10), 1, %s653_s16  }
  0x10   : > { %369 = vperm.xlu0 (!%p209_p10), %585, %v366_v2   ;;  %v273_v6 = vld [vmem:[%s820_s0] sm:$0xff] (!%p209_p10)  ;;  %s515_s21 = sshll.u32 (!%p209_p10), %s243_s14, 4  ;;  %s527_s22 = sshll.u32 (!%p209_p10), %s661_s18, 8 }
  0x11   : > { %s245_s24 = scalar_lea.vmem (!%p209_p10), [#allocation3], %s515_s21  ;;  %s393_s6 = scalar_lea.sflag (!%p209_p10), [#allocation4], %s243_s14 }
  0x12   : > { %s409_s26 = sshll.u32 (!%p209_p10), %s245_s24, 4  ;;  %s775_s26 = int_to_ptr.vmem [resolvable:$true] %s409_s26 }
  0x13   : > { %s591_s7 = scalar_lea.vmem (!%p209_p10), %s775_s26, 256 }
  0x14   : > { %377 = vperm.xlu0 (!%p209_p10), %585, %v374_v3   ;;  %p592_p12 = scmp.ne.s32.totalorder (!%p209_p10), %s775_s26, %s591_s7 }
  0x16   : > { %s252_s5 = scalar_select %p251_p11, %s661_s18, 1 }
  0x17   : > { %p593_p13 = pnand %p592_p12, %p739_p4  ;;  %s673_s18 = smov [#allocation3]  }
  0x18   : > { %s526_s8 = sshll.u32 %s252_s5, 3  ;;  %s773_s5 = scalar_lea.hbm %s824_s4, %s527_s22 }
  0x19   : > { %s262_s11 = scalar_lea.vmem %s821_s1, %s526_s8  ;;  %p594_p0 = pneg %p593_p13 }
  0x1a   : > { %v274_v4 = vld [vmem:[%s262_s11] sm:$0xff]  ;;  %s595_s8 = sshll.u32 %s673_s18, 4  ;;  %s596_s8 = int_to_ptr.vmem [resolvable:$false] %s595_s8 }
  0x1b   : > { %v276_v5 = vcombine.high %v274_v4, %v274_v4  ;;  %s597_s9 = scalar_lea.vmem %s596_s8, 512  ;;  %p598_p1 = scmp.lt.s32.totalorder %s775_s26, %s596_s8 }
  0x1c   : > { %p599_p2 = scmp.lt.s32.totalorder %s597_s9, %s591_s7 }
  0x1d   : > { %518 = vmatprep.subr.msk.mxu0 %vm281_vm0, %v276_v5 }
  0x1e   : > { %519 = vmatpush1.msk.msra.mxu0 %vm281_vm0, %v274_v4  ;;  %p600_p3 = por %p599_p2, %p598_p1 }
  0x1f   : > { %520 = vmatmul.mubr.msk.f32.vlgmr.msra.gmra.mrb[0].mxu0 %vm277_vm1, %v273_v6 }
  0x20   : > { %p601_p5 = pnand %p600_p3, %p594_p0 }
  0x8f   : > { %v370_v7 = vpop.permute.xlu0 %369 }
  0x93   : > { %v378_v11 = vpop.permute.xlu0 %377 }
  0xf2   : > { %v352_v8 = vpop.f32.mrb[0].mxu0 }
  0xf3   : > { %v372_v9 = vmul.f32 %v370_v7, %v352_v8  ;;  %v354_v10 = vpop.f32.mrb[1].mxu0 }
  0xf4   : > { %v373_v12 = vmul.f32 %v370_v7, %v354_v10 }
  0xf5   : > { %v380_v13 = vadd.f32 %v378_v11, %v372_v9 }
  0xf6   : > { %v381_v14 = vadd.f32 %v378_v11, %v373_v12 }
  0xf7   : > { %v382_v15 = vmul.f32 0.5, %v380_v13 }
  0xf8   : > { %v383_v16 = vmul.f32 0.5, %v381_v14 }
  0xf9   : > { %587 = vtanh.f32 %v382_v15 }
  0xfa   : > { %589 = vtanh.f32 %v383_v16 }
 0x103   : > { %v588_v17 = vpop.eup %587 }
 0x104   : > { %v590_v18 = vpop.eup %589  ;;  %v386_v19 = vadd.f32 1.0, %v588_v17 }
 0x105   : > { %v387_v20 = vadd.f32 1.0, %v590_v18 }
 0x106   : > { %v388_v21 = vmul.f32 %v386_v19, %v382_v15 }
 0x107   : > { %v389_v22 = vmul.f32 %v387_v20, %v383_v16 }
 0x108   : > { %390 = vst [vmem:[%s245_s24] sm:$0xff] %v388_v21 }
 0x109   : > { %391 = vst [vmem:[%s245_s24 + $0x8] sm:$0xff] %v389_v22 }
 0x10a   : > { %604 = shalt.err (!%p601_p5)
}
 0x10b   : > { %s605_s10 = scalar_lea.hbm %s773_s5, 256  ;;  %s609_s13 = scalar_lea.hbm %s824_s4, 512 }
 0x10c   : > { %p606_p6 = scmp.ne.s32.totalorder %s773_s5, %s605_s10  ;;  %p610_p10 = scmp.lt.u32.totalorder %s773_s5, %s824_s4 }
 0x10d   : > { %p611_p11 = scmp.lt.u32.totalorder %s609_s13, %s605_s10  ;;  %p613_p13 = scmp.lt.u32.totalorder %s605_s10, %s773_s5 }
 0x10e   : > { %p607_p7 = pnand %p606_p6, %p739_p4 }
 0x10f   : > { %p612_p12 = por %p611_p11, %p610_p10 }
 0x110   : > { %p608_p9 = pneg %p607_p7 }
 0x111   : > { %p614_p0 = por %p613_p13, %p612_p12 }
 0x113   : > { %p615_p1 = pnand %p614_p0, %p608_p9 }
 0x115   : > { %618 = shalt.err (!%p615_p1)
}
 0x116   : > { %528 = dma.vmem_to_hbm [thread:$0]  (%p739_p4), %s775_s26, 256, %s773_s5, %s393_s6  }
 0x117 PF: > { %p534_p2 = scmp.ge.s32.totalorder %s669_s20, 2  ;;  %s421_s22 = sand.u32 1, %s649_s15  }
 0x118   : > { %s422_s24 = scalar_lea.sflag [#allocation4], %s421_s22 }
 0x119   : > { %p531_p3 = pnand %p534_p2, %p746_p8 }
 0x11b   : > { %644 = dma.done.wait (!%p531_p3), %s422_s24, 256  }
 0x11c   : > { %646 = vsyncadd (!%p531_p3), %s422_s24, 4294967040  ;;  %s17_s20 = sadd.s32 1, %s669_s20   ;;  %s827_s15 = smov %s653_s16 }
 0x11d   : > { %p14_p5 = scmp.ge.s32.totalorder %s17_s20, 4   ;;  %s828_s16 = smov %s657_s17 }
 0x11e   : > { %s829_s17 = smov %s752_s28  ;;  %s830_s18 = smov %s665_s19 }
 0x11f   : > { %s831_s19 = smov %s833_s23  ;;  %16 = sbr.rel (!%p14_p5) target bundleno = 4 (0x4), region = 82 }
 0x126   :  { %427 = vsyncpa [#allocation4], 1 }
 0x127   :  { %429 = vsyncpa [#allocation4 + $0x1], 1 }

</bundles_post_ra>
